<compile_context>
chip_gen: v6e
topology: v6e:2x2x1
jax: 0.10.0
libtpu: 0.0.40
codegen_flags: <defaults>
</compile_context>

<pallas_src>
import functools
import math

import jax
import jax.numpy as jnp
from jax.experimental import pallas as pl
from jax.experimental.pallas import tpu as pltpu


_LANE = 128                    # feature dims padded to multiples of this (lane-dense stores)
_SUBLANE = 8
_COMPUTE_DTYPE = jnp.bfloat16  # MXU operand dtype (accumulation stays f32)

_BUFFERED = getattr(pl, "Buffered", None)


def _round_up(x, m):
    return ((x + m - 1) // m) * m


@functools.lru_cache(maxsize=1)
def _vmem_limit_bytes():
    """Generation-aware VMEM budget: ~3/4 of physical, capped at 100 MiB."""
    cap = None
    try:
        info = pltpu.get_tpu_info()
        cap = getattr(info, "vmem_capacity_bytes", None)
    except Exception:
        cap = None
    if not cap:
        cap = 64 * 1024 * 1024      # conservative default (v7x physical per-core VMEM)
    return int(min(cap * 3 // 4, 100 * 1024 * 1024))


def _resident_spec(shape):
    """Constant-index block (weights/bias): single-buffered when supported."""
    if _BUFFERED is not None:
        try:
            return pl.BlockSpec(shape, lambda i: (0, 0), pipeline_mode=_BUFFERED(1))
        except TypeError:
            pass
    return pl.BlockSpec(shape, lambda i: (0, 0))


def _pick_tile(dim, candidates=(1024, 512, 256, 128)):
    for c in candidates:
        if dim % c == 0:
            return min(c, dim)
    return dim


# ---------------------------------------------------------------------------
# Fused kernel: all layers in one pallas_call, weights resident in VMEM.
# ---------------------------------------------------------------------------
def _make_fused_mlp_kernel(n_layers):
    """Builds kernel(x_ref, w0, b0, ..., w{L-1}, b{L-1}, o_ref)."""

    def kernel(*refs):
        x_ref = refs[0]
        o_ref = refs[-1]
        h = x_ref[...]                                    # (tm, D0p) bf16
        for l in range(n_layers):
            w_ref = refs[1 + 2 * l]                       # (D_l_p, D_{l+1}_p) bf16, resident
            b_ref = refs[2 + 2 * l]                       # (1, D_{l+1}_p)     f32
            acc = jnp.dot(h, w_ref[...], preferred_element_type=jnp.float32)  # MXU, f32 acc
            acc = acc + b_ref[...]                        # bias (VPU, f32)
            acc = jnp.maximum(acc, 0.0)                   # ReLU after every Linear
            if l + 1 < n_layers:
                h = acc.astype(_COMPUTE_DTYPE)            # bf16 for next MXU matmul
            else:
                o_ref[...] = acc.astype(o_ref.dtype)
        # TODO(synk): dropout>0 (inverted dropout via pltpu.prng_*) and BatchNorm1d are
        # not emitted: module defaults (dropout=0, use_batchnorm=False) make them
        # identity / absent.
        # TODO(synk): for very wide output layers (Np >= ~2048 at tm=512), chunk the dot
        # over N to bound the live f32 accumulator (matters most on v7x's 64 MiB VMEM).

    return kernel


# ---------------------------------------------------------------------------
# Fallback: per-layer (M, N, K)-tiled Linear+ReLU (weights streamed from HBM).
# ---------------------------------------------------------------------------
def _linear_relu_kernel(x_ref, w_ref, b_ref, o_ref, acc_ref):
    k = pl.program_id(2)

    @pl.when(k == 0)
    def _():
        acc_ref[...] = jnp.zeros_like(acc_ref)

    acc_ref[...] += jnp.dot(x_ref[...], w_ref[...], preferred_element_type=jnp.float32)

    @pl.when(k == pl.num_programs(2) - 1)
    def _():
        o_ref[...] = jnp.maximum(acc_ref[...] + b_ref[...], 0.0).astype(o_ref.dtype)


def _linear_relu(x_p, w_p, b_p, out_dtype, tm, vmem_limit):
    Mp, Kp = x_p.shape
    _, Np = w_p.shape
    tn = _pick_tile(Np)
    tk = _pick_tile(Kp)
    grid = (Mp // tm, Np // tn, Kp // tk)
    return pl.pallas_call(
        _linear_relu_kernel,
        out_shape=jax.ShapeDtypeStruct((Mp, Np), out_dtype),
        grid_spec=pltpu.PrefetchScalarGridSpec(
            num_scalar_prefetch=0,
            grid=grid,
            in_specs=[pl.BlockSpec((tm, tk), lambda i, j, k: (i, k)),
                      pl.BlockSpec((tk, tn), lambda i, j, k: (k, j)),
                      pl.BlockSpec((1, tn), lambda i, j, k: (0, j))],
            out_specs=pl.BlockSpec((tm, tn), lambda i, j, k: (i, j)),
            scratch_shapes=[pltpu.VMEM((tm, tn), jnp.float32)],
        ),
        compiler_params=pltpu.CompilerParams(
            dimension_semantics=("parallel", "parallel", "arbitrary"),
            vmem_limit_bytes=vmem_limit,
        ),
    )(x_p, w_p, b_p)


# ---------------------------------------------------------------------------
# Forward
# ---------------------------------------------------------------------------
@functools.partial(jax.jit, static_argnums=(2, 3, 4))
def _mlp_forward_jit(x, padded_params, d_in, d_out, tm):
    n_layers = len(padded_params)
    M = x.shape[0]
    dims_p = [padded_params[0][0].shape[0]] + [w.shape[1] for w, _ in padded_params]
    Mp = _round_up(M, tm)
    out_dtype = x.dtype
    out_itemsize = jnp.dtype(out_dtype).itemsize
    vmem_limit = _vmem_limit_bytes()

    # --- input: fast path when already aligned (no pad copy; cast only if needed) ---
    if M == Mp and d_in == dims_p[0]:
        x_p = x if x.dtype == _COMPUTE_DTYPE else x.astype(_COMPUTE_DTYPE)
    else:
        x_p = jnp.zeros((Mp, dims_p[0]), _COMPUTE_DTYPE).at[:M, :d_in].set(
            x.astype(_COMPUTE_DTYPE))

    # --- VMEM budget (single-buffered resident weights + double-buffered I/O tiles) ---
    weight_bytes = sum(dims_p[l] * dims_p[l + 1] * 2 + dims_p[l + 1] * 4
                       for l in range(n_layers))
    io_tile_bytes = 2 * (tm * dims_p[0] * 2 + tm * dims_p[-1] * out_itemsize)
    act_bytes = 3 * tm * max(dims_p) * 4      # f32 acc + h + dot temporaries (rough)
    vmem_est = weight_bytes + io_tile_bytes + act_bytes

    if vmem_est <= vmem_limit:
        # ---------------- fused path: one pallas_call for the whole chain ----------
        flat_inputs = [x_p]
        in_specs = [pl.BlockSpec((tm, dims_p[0]), lambda i: (i, 0))]
        for (w_p, b_p) in padded_params:
            flat_inputs += [w_p, b_p]
            in_specs += [_resident_spec(w_p.shape), _resident_spec(b_p.shape)]

        flops = sum(2 * Mp * dims_p[l] * dims_p[l + 1] for l in range(n_layers))
        bytes_accessed = (Mp * dims_p[0] * 2 + weight_bytes
                          + Mp * dims_p[-1] * out_itemsize)

        out_p = pl.pallas_call(
            _make_fused_mlp_kernel(n_layers),
            out_shape=jax.ShapeDtypeStruct((Mp, dims_p[-1]), out_dtype),
            grid_spec=pltpu.PrefetchScalarGridSpec(
                num_scalar_prefetch=0,
                grid=(Mp // tm,),
                in_specs=in_specs,
                out_specs=pl.BlockSpec((tm, dims_p[-1]), lambda i: (i, 0)),
            ),
            compiler_params=pltpu.CompilerParams(
                # TODO(synk): on v7x consider pltpu.CORE_PARALLEL / explicit core_map to
                # guarantee the row-tile axis splits across the 2 TensorCores.
                dimension_semantics=("parallel",),
                vmem_limit_bytes=vmem_limit,
            ),
            cost_estimate=pl.CostEstimate(
                flops=flops, transcendentals=0, bytes_accessed=bytes_accessed),
        )(*flat_inputs)
    else:
        # ---------------- fallback: per-layer tiled matmul+bias+ReLU ---------------
        h = x_p
        for l, (w_p, b_p) in enumerate(padded_params):
            layer_out_dtype = out_dtype if l == n_layers - 1 else _COMPUTE_DTYPE
            h = _linear_relu(h, w_p, b_p, layer_out_dtype, tm, vmem_limit)
        out_p = h

    return out_p[:M, :d_out]


def prepare_params(params):
    """Pad + cast weights/biases ONCE (reused across calls; avoids per-call HBM traffic).

    `params` is a list of (w, b) with w of shape (in_features, out_features) ==
    W_pytorch.T and b of shape (1, out_features).  Returns (padded_params, d_in, d_out).
    """
    d_in = params[0][0].shape[0]
    d_out = params[-1][0].shape[1]
    padded = []
    for (w, b) in params:
        k, n = w.shape
        kp, np_ = _round_up(k, _LANE), _round_up(n, _LANE)
        w_p = jnp.zeros((kp, np_), _COMPUTE_DTYPE).at[:k, :n].set(
            w.astype(_COMPUTE_DTYPE))
        b_p = jnp.zeros((1, np_), jnp.float32).at[0, :n].set(
            b.reshape(-1).astype(jnp.float32))
        padded.append((w_p, b_p))
    # TODO(synk): optional int8 (v5e/v6e) / fp8 (v7x) weight path with per-channel
    # scales folded into the bias for weight-bound configurations.
    return tuple(padded), d_in, d_out


def mlp_forward(x, prepared, *, tm_max=512):
    """Fused MLP forward: relu(x @ W_l + b_l) chained, one pallas_call when it fits VMEM."""
    padded_params, d_in, d_out = prepared
    M = x.shape[0]
    tm = max(_SUBLANE, min(tm_max, _round_up(M, _SUBLANE)))   # adaptive row tile
    return _mlp_forward_jit(x, padded_params, d_in, d_out, tm)


def init_mlp_params(key, inner_dims):
    """PyTorch nn.Linear default init: U(-1/sqrt(fan_in), +1/sqrt(fan_in)).
    Weights stored as (in_features, out_features) == W_pytorch.T."""
    params = []
    for i in range(len(inner_dims) - 1):
        fan_in, fan_out = inner_dims[i], inner_dims[i + 1]
        key, kw, kb = jax.random.split(key, 3)
        bound = 1.0 / math.sqrt(fan_in)
        w = jax.random.uniform(kw, (fan_in, fan_out), jnp.float32, -bound, bound)
        b = jax.random.uniform(kb, (1, fan_out), jnp.float32, -bound, bound)
        params.append((w, b))
    return params


if __name__ == "__main__":
    # Small shapes consistent with MLP(*inner_dims): batch=8, dims 16 -> 32 -> 8
    inner_dims = (16, 32, 8)
    batch = 8

    key = jax.random.PRNGKey(0)
    key, kx = jax.random.split(key)
    x = jax.random.normal(kx, (batch, inner_dims[0]), jnp.float32)

    params = init_mlp_params(jax.random.PRNGKey(0), inner_dims)
    prepared = prepare_params(params)          # pad/cast once; reused every forward

    out = mlp_forward(x, prepared)
    out = jax.block_until_ready(out)

    # Plain-JAX f32 reference (exact module math). Kernel uses bf16 MXU operands
    # with f32 accumulation, so compare with bf16-appropriate tolerance.
    ref = x
    for w, b in params:
        ref = jnp.maximum(ref @ w + b, 0.0)

    assert out.shape == (batch, inner_dims[-1])
    assert jnp.allclose(out, ref, atol=2e-2, rtol=2e-2), "mismatch vs reference"

    print("KERNEL_OK")
</pallas_src>

<mosaic_0001>
module attributes {stable_mosaic.version = 11 : i64} {
  func.func @kernel(%arg0: i32, %arg1: memref<8x128xbf16, #tpu.memory_space<vmem>>, %arg2: memref<128x128xbf16, #tpu.memory_space<vmem>>, %arg3: memref<1x128xf32, #tpu.memory_space<vmem>>, %arg4: memref<128x128xbf16, #tpu.memory_space<vmem>>, %arg5: memref<1x128xf32, #tpu.memory_space<vmem>>, %arg6: memref<8x128xf32, #tpu.memory_space<vmem>>) attributes {dimension_semantics = [#tpu.dimension_semantics<parallel>], iteration_bounds = array<i64: 1>, scalar_prefetch = 0 : i64, scratch_operands = 0 : i64, tpu.core_type = #tpu.core_type<tc>, window_params = [{transform_indices = @transform_0, window_bounds = array<i64: 8, 128>}, {pipeline_mode = #tpu.pipeline_mode<synchronous>, transform_indices = @transform_1, window_bounds = array<i64: 128, 128>}, {pipeline_mode = #tpu.pipeline_mode<synchronous>, transform_indices = @transform_2, window_bounds = array<i64: 1, 128>}, {pipeline_mode = #tpu.pipeline_mode<synchronous>, transform_indices = @transform_3, window_bounds = array<i64: 128, 128>}, {pipeline_mode = #tpu.pipeline_mode<synchronous>, transform_indices = @transform_4, window_bounds = array<i64: 1, 128>}, {transform_indices = @transform_5, window_bounds = array<i64: 8, 128>}]} {
    %c0 = arith.constant 0 : index
    %c0_0 = arith.constant 0 : index
    %0 = vector.load %arg1[%c0, %c0_0] : memref<8x128xbf16, #tpu.memory_space<vmem>>, vector<8x128xbf16>
    %c0_1 = arith.constant 0 : index
    %c0_2 = arith.constant 0 : index
    %1 = vector.load %arg2[%c0_1, %c0_2] : memref<128x128xbf16, #tpu.memory_space<vmem>>, vector<128x128xbf16>
    %cst = arith.constant dense<0.000000e+00> : vector<8x128xf32>
    %2 = tpu.matmul %0, %1, %cst {dimension_numbers = #tpu.dot_dimension_numbers<[1], [0], [0], [1], [0, 0, 1, 1], [], []>} : vector<8x128xbf16>, vector<128x128xbf16>, vector<8x128xf32> -> vector<8x128xf32>
    %c0_3 = arith.constant 0 : index
    %c0_4 = arith.constant 0 : index
    %3 = vector.load %arg3[%c0_3, %c0_4] : memref<1x128xf32, #tpu.memory_space<vmem>>, vector<1x128xf32>
    %4 = vector.broadcast %3 : vector<1x128xf32> to vector<8x128xf32>
    %5 = arith.addf %2, %4 : vector<8x128xf32>
    %cst_5 = arith.constant 0.000000e+00 : f32
    %6 = vector.broadcast %cst_5 : f32 to vector<8x128xf32>
    %7 = arith.maximumf %5, %6 : vector<8x128xf32>
    %8 = arith.truncf %7 : vector<8x128xf32> to vector<8x128xbf16>
    %c0_6 = arith.constant 0 : index
    %c0_7 = arith.constant 0 : index
    %9 = vector.load %arg4[%c0_6, %c0_7] : memref<128x128xbf16, #tpu.memory_space<vmem>>, vector<128x128xbf16>
    %cst_8 = arith.constant dense<0.000000e+00> : vector<8x128xf32>
    %10 = tpu.matmul %8, %9, %cst_8 {dimension_numbers = #tpu.dot_dimension_numbers<[1], [0], [0], [1], [0, 0, 1, 1], [], []>} : vector<8x128xbf16>, vector<128x128xbf16>, vector<8x128xf32> -> vector<8x128xf32>
    %c0_9 = arith.constant 0 : index
    %c0_10 = arith.constant 0 : index
    %11 = vector.load %arg5[%c0_9, %c0_10] : memref<1x128xf32, #tpu.memory_space<vmem>>, vector<1x128xf32>
    %12 = vector.broadcast %11 : vector<1x128xf32> to vector<8x128xf32>
    %13 = arith.addf %10, %12 : vector<8x128xf32>
    %cst_11 = arith.constant 0.000000e+00 : f32
    %14 = vector.broadcast %cst_11 : f32 to vector<8x128xf32>
    %15 = arith.maximumf %13, %14 : vector<8x128xf32>
    %c0_12 = arith.constant 0 : index
    %c0_13 = arith.constant 0 : index
    %16 = vector.load %arg6[%c0_12, %c0_13] : memref<8x128xf32, #tpu.memory_space<vmem>>, vector<8x128xf32>
    tpu.vector_store %arg6[%c0_12, %c0_13], %15 {strides = array<i32>} : memref<8x128xf32, #tpu.memory_space<vmem>>, vector<8x128xf32>,
    return
  }
  func.func @transform_0(%arg0: i32) -> (i32, i32) {
    %c0_i32 = arith.constant 0 : i32
    %c0_i32_0 = arith.constant 0 : i32
    return %arg0, %c0_i32 : i32, i32
  }
  func.func @transform_1(%arg0: i32) -> (i32, i32) {
    %c0_i32 = arith.constant 0 : i32
    %c0_i32_0 = arith.constant 0 : i32
    %c0_i32_1 = arith.constant 0 : i32
    return %c0_i32, %c0_i32_0 : i32, i32
  }
  func.func @transform_2(%arg0: i32) -> (i32, i32) {
    %c0_i32 = arith.constant 0 : i32
    %c0_i32_0 = arith.constant 0 : i32
    %c0_i32_1 = arith.constant 0 : i32
    return %c0_i32, %c0_i32_0 : i32, i32
  }
  func.func @transform_3(%arg0: i32) -> (i32, i32) {
    %c0_i32 = arith.constant 0 : i32
    %c0_i32_0 = arith.constant 0 : i32
    %c0_i32_1 = arith.constant 0 : i32
    return %c0_i32, %c0_i32_0 : i32, i32
  }
  func.func @transform_4(%arg0: i32) -> (i32, i32) {
    %c0_i32 = arith.constant 0 : i32
    %c0_i32_0 = arith.constant 0 : i32
    %c0_i32_1 = arith.constant 0 : i32
    return %c0_i32, %c0_i32_0 : i32, i32
  }
  func.func @transform_5(%arg0: i32) -> (i32, i32) {
    %c0_i32 = arith.constant 0 : i32
    %c0_i32_0 = arith.constant 0 : i32
    return %arg0, %c0_i32 : i32, i32
  }
}

</mosaic_0001>

<bundles_post_ra>
// kernel: _mlp_forward_jit.1
= control target key start
LH: loop header
LB: loop body
LE: loop exit
PB: predicated region body
PF: predicated region fallthrough
CT: control target
= control target key end

     0   :  { %10 = vsyncpa [#allocation3], 0  ;;  %s513_s0 = inlined_call_operand.vmem [shape: bf16[8,128], index: 0, kind: input, shape index: {}]   ;;  %s514_s1 = inlined_call_operand.hbm [shape: bf16[128,128], index: 1, kind: input, shape index: {}]   ;;  %s515_s2 = inlined_call_operand.vmem [shape: f32[1,128], index: 2, kind: input, shape index: {}]   ;;  %s516_s3 = inlined_call_operand.hbm [shape: bf16[128,128], index: 3, kind: input, shape index: {}]   ;;  %s517_s4 = inlined_call_operand.vmem [shape: f32[1,128], index: 4, kind: input, shape index: {}]   ;;  %s518_s5 = inlined_call_operand.hbm [shape: f32[8,128], index: 5, kind: output, shape index: {}]  }
   0x1   :  { %11 = vsyncpa [#allocation6], 0 }
   0x2   :  { %12 = vsyncpa [#allocation4], 0  ;;  %s458_s18 = smov [#allocation2]  }
   0x3   :  { %s20_s19 = sshll.u32 %s458_s18, 4  ;;  %s21_s19 = int_to_ptr.vmem [resolvable:$true] %s20_s19 }
   0x4   :  { %s400_s20 = scalar_lea.vmem %s21_s19, 1024  ;;  %p405_p1 = scmp.lt.s32.totalorder %s21_s19, %s21_s19 }
   0x5   :  { %p401_p0 = scmp.ne.s32.totalorder %s21_s19, %s400_s20  ;;  %p406_p2 = scmp.lt.s32.totalorder %s400_s20, %s400_s20 }
   0x7   :  { %p407_p3 = por %p406_p2, %p405_p1 }
   0x9   :  { %p408_p4 = pnand %p407_p3, %p401_p0 }
   0xb   :  { %411 = shalt.err (!%p408_p4)
}
   0xc   :  { %s459_s21 = smov 64   ;;  %s460_s22 = smov 4  }
   0xd   :  { %26 = dma.hbm_to_vmem [thread:$0]  %s514_s1, 1024, %s21_s19, [#allocation3], %s459_s21, %s459_s21, %s460_s22  }
   0xe   :  { %s461_s25 = smov [#allocation5]  }
   0xf   :  { %s34_s26 = sshll.u32 %s461_s25, 4  ;;  %s35_s26 = int_to_ptr.vmem [resolvable:$true] %s34_s26 }
  0x10   :  { %s420_s27 = scalar_lea.vmem %s35_s26, 1024  ;;  %p425_p6 = scmp.lt.s32.totalorder %s35_s26, %s35_s26 }
  0x11   :  { %p421_p5 = scmp.ne.s32.totalorder %s35_s26, %s420_s27  ;;  %p426_p7 = scmp.lt.s32.totalorder %s420_s27, %s420_s27 }
  0x13   :  { %p427_p8 = por %p426_p7, %p425_p6 }
  0x15   :  { %p428_p9 = pnand %p427_p8, %p421_p5 }
  0x17   :  { %431 = shalt.err (!%p428_p9)
}
  0x18   :  { %40 = dma.hbm_to_vmem [thread:$0]  %s516_s3, 1024, %s35_s26, [#allocation6], %s459_s21, %s459_s21, %s460_s22  }
  0x19   :  { %452 = dma.done.wait [#allocation3], 1024  }
  0x1a   :  { %453 = vsyncadd [#allocation3], 4294966272 }
  0x1b   :  { %454 = dma.done.wait [#allocation6], 1024  }
  0x1c   :  { %455 = vsyncadd [#allocation6], 4294966272  ;;  %v462_v0 = vmov 0.0   ;;  %vm463_vm0 = vmmov 0   ;;  %v376_v1 = vld [vmem:[#allocation2 + $0x38] sm:$0xff]   ;;  %v377_v2 = vld [vmem:[#allocation2 + $0x30] sm:$0xff]  }
  0x1d   :  { %329 = vmatprep.subr.bf16.mxu0 %v462_v0  ;;  %345 = vmatprep.mubr.msk.bf16.mxu0 %vm463_vm0, %v462_v0  ;;  %v378_v3 = vld [vmem:[#allocation2 + $0x28] sm:$0xff]   ;;  %v384_v4 = vld [vmem:[#allocation5 + $0x38] sm:$0xff]   ;;  %v379_v5 = vld [vmem:[#allocation2 + $0x20] sm:$0xff]   ;;  %s464_s8 = smov [#allocation7]  }
  0x1e   :  { %349 = vmatprep.subr.bf16.mxu1 %v462_v0  ;;  %365 = vmatprep.mubr.msk.bf16.mxu1 %vm463_vm0, %v462_v0  ;;  %v385_v6 = vld [vmem:[#allocation5 + $0x30] sm:$0xff]   ;;  %v380_v7 = vld [vmem:[#allocation2 + $0x18] sm:$0xff]   ;;  %v386_v8 = vld [vmem:[#allocation5 + $0x28] sm:$0xff]   ;;  %s283_s9 = sshll.u32 %s464_s8, 4  ;;  %s284_s9 = int_to_ptr.vmem [resolvable:$true] %s283_s9 }
  0x1f   :  { %330 = vmatpush3.bf16.msra.mxu0 %v376_v1  ;;  %350 = vmatpush3.bf16.msra.mxu1 %v384_v4  ;;  %v381_v9 = vld [vmem:[#allocation2 + $0x10] sm:$0xff]   ;;  %v387_v10 = vld [vmem:[#allocation5 + $0x20] sm:$0xff]   ;;  %v382_v11 = vld [vmem:[#allocation2 + $0x8] sm:$0xff]   ;;  %p437_p11 = scmp.lt.s32.totalorder %s284_s9, %s284_s9 }
  0x20   :  { %331 = vmatprep.subr.bf16.mxu0 %v462_v0  ;;  %351 = vmatprep.subr.bf16.mxu1 %v462_v0  ;;  %v388_v12 = vld [vmem:[#allocation5 + $0x18] sm:$0xff]   ;;  %v383_v13 = vld [vmem:[#allocation2] sm:$0xff]   ;;  %v389_v14 = vld [vmem:[#allocation5 + $0x10] sm:$0xff]  }
  0x21   :  { %v50_v15 = vld [vmem:[%s513_s0] sm:$0xf]  ;;  %v390_v16 = vld [vmem:[#allocation5 + $0x8] sm:$0xff]  }
  0x22   :  { %v391_v17 = vld [vmem:[#allocation5] sm:$0xff]  }
  0x23   :  { %332 = vmatpush3.bf16.msra.mxu0 %v377_v2  ;;  %352 = vmatpush3.bf16.msra.mxu1 %v385_v6  ;;  %v293_v18 = vld [vmem:[%s515_s2] ss:$0 sm:$0xff]  ;;  %s432_s2 = scalar_lea.vmem %s284_s9, 128 }
  0x24   :  { %333 = vmatprep.subr.bf16.mxu0 %v462_v0  ;;  %353 = vmatprep.subr.bf16.mxu1 %v462_v0  ;;  %v302_v26 = vld [vmem:[%s517_s4] ss:$0 sm:$0xff]  ;;  %p433_p10 = scmp.ne.s32.totalorder %s284_s9, %s432_s2  ;;  %p438_p12 = scmp.lt.s32.totalorder %s432_s2, %s432_s2 }
  0x26   :  { %p439_p13 = por %p438_p12, %p437_p11 }
  0x27   :  { %334 = vmatpush3.bf16.msra.mxu0 %v378_v3  ;;  %354 = vmatpush3.bf16.msra.mxu1 %v386_v8 }
  0x28   :  { %335 = vmatprep.subr.bf16.mxu0 %v462_v0  ;;  %355 = vmatprep.subr.bf16.mxu1 %v462_v0  ;;  %p440_p0 = pnand %p439_p13, %p433_p10 }
  0x2b   :  { %336 = vmatpush3.bf16.msra.mxu0 %v379_v5  ;;  %356 = vmatpush3.bf16.msra.mxu1 %v387_v10 }
  0x2c   :  { %337 = vmatprep.subr.bf16.mxu0 %v462_v0  ;;  %357 = vmatprep.subr.bf16.mxu1 %v462_v0 }
  0x2f   :  { %338 = vmatpush3.bf16.msra.mxu0 %v380_v7  ;;  %358 = vmatpush3.bf16.msra.mxu1 %v388_v12 }
  0x30   :  { %339 = vmatprep.subr.bf16.mxu0 %v462_v0  ;;  %359 = vmatprep.subr.bf16.mxu1 %v462_v0 }
  0x33   :  { %340 = vmatpush3.bf16.msra.mxu0 %v381_v9  ;;  %360 = vmatpush3.bf16.msra.mxu1 %v389_v14 }
  0x34   :  { %341 = vmatprep.subr.bf16.mxu0 %v462_v0  ;;  %361 = vmatprep.subr.bf16.mxu1 %v462_v0 }
  0x37   :  { %342 = vmatpush3.bf16.msra.mxu0 %v382_v11  ;;  %362 = vmatpush3.bf16.msra.mxu1 %v390_v16 }
  0x38   :  { %343 = vmatprep.subr.bf16.mxu0 %v462_v0  ;;  %363 = vmatprep.subr.bf16.mxu1 %v462_v0 }
  0x3b   :  { %344 = vmatpush3.bf16.msra.mxu0 %v383_v13  ;;  %364 = vmatpush3.bf16.msra.mxu1 %v391_v17 }
  0x3e   :  { %346 = vmatmul.mubr.bf16.vlgmr.msra.gmra.mxu0 %v50_v15 }
  0xfe   :  { %v156_v19 = vpop.f32.mrf.mxu0 }
  0xff   :  { %v157_v20 = vadd.f32 %v293_v18, %v156_v19 }
 0x100   :  { %v347_v21 = vpop.f32.mrf.mxu0 }
 0x101   :  { %v162_v22 = vmax.f32 %v157_v20, 0.0 }
 0x102   :  { %v159_v23 = vpop.f32.mrf.mxu0 }
 0x103   :  { %v163_v24 = vpack.c.bf16 %v162_v22, %v162_v22 }
 0x104   :  { %v348_v25 = vpop.f32.mrf.mxu0 }
 0x105   :  { %366 = vmatmul.mubr.bf16.vlgmr.msra.gmra.mxu1 %v163_v24 }
 0x1c5   :  { %v269_v27 = vpop.f32.mrf.mxu1 }
 0x1c6   :  { %v270_v28 = vadd.f32 %v302_v26, %v269_v27 }
 0x1c7   :  { %v367_v29 = vpop.f32.mrf.mxu1 }
 0x1c8   :  { %v275_v30 = vmax.f32 %v270_v28, 0.0 }
 0x1c9   :  { %v272_v31 = vpop.f32.mrf.mxu1 }
 0x1ca   :  { %276 = vst [vmem:[#allocation7] sm:$0xff] %v275_v30 }
 0x1cb   :  { %v368_v32 = vpop.f32.mrf.mxu1 }
 0x1cc   :  { %443 = shalt.err (!%p440_p0)
}
 0x1cd   :  { %286 = dma.vmem_to_hbm [thread:$0]  %s284_s9, 128, %s518_s5, [#allocation4]  }
 0x1ce   :  { %456 = dma.done.wait [#allocation4], 128  }
 0x1cf   :  { %457 = vsyncadd [#allocation4], 4294967168 }
 0x1d0   :  { %290 = vsyncpa [#allocation3], 1 }
 0x1d1   :  { %291 = vsyncpa [#allocation6], 1 }
 0x1d2   :  { %292 = vsyncpa [#allocation4], 1 }

</bundles_post_ra>
